<compile_context>
chip_gen: v7x
topology: tpu7x:2x2x1
jax: 0.10.0
libtpu: 0.0.40
codegen_flags: <defaults>
</compile_context>

<pallas_src>
import functools
import math

import jax
import jax.numpy as jnp
from jax import lax
from jax.experimental import pallas as pl
from jax.experimental.pallas import tpu as pltpu

_RESIDENT_VMEM_BUDGET = 24 << 20  # conservative: fits v7x (64 MiB/TC) and v5e/v6e (128 MiB)


def _round_up(x, m):
    return (x + m - 1) // m * m


def _choose_tiling(L, token_tile):
    """Pick (TL, L_pad): TL multiple of 8, TL | L_pad, minimal padding past L."""
    L8 = _round_up(L, 8)
    if L8 <= token_tile:
        return L8, L8
    # largest multiple-of-8 divisor of L8 that is <= token_tile (minimises tail padding)
    best = 8
    d = (token_tile // 8) * 8
    while d >= 8:
        if L8 % d == 0:
            best = d
            break
        d -= 8
    if best >= 64:
        return best, L8
    # degenerate (e.g. L8/8 prime): fall back to padding up to a multiple of token_tile
    return token_tile, _round_up(L, token_tile)


def _seq_embed_resident_kernel(ids_ref, pos_ref, tok_ref, out_ref, *, scale, tl, l_pad):
    """VMEM-resident table path. One grid step = one (seq tile, batch row).

    ids_ref : (B*L_pad,) int32 SMEM (scalar prefetch, flattened)
    pos_ref : (TL, H)    VMEM  (this tile's position rows; reused across batch rows)
    tok_ref : (V, H)     VMEM  (whole token table, constant block index)
    out_ref : (TL, H)    VMEM  output block (batch dim squeezed)
    """
    s = pl.program_id(0)
    b = pl.program_id(1)
    base = b * l_pad + s * tl

    def row(j, carry):
        tid = ids_ref[base + j]
        tok_row = tok_ref[pl.ds(tid, 1), :]          # (1, H) dynamic row load from VMEM
        out_ref[pl.ds(j, 1), :] = (tok_row * scale + pos_ref[pl.ds(j, 1), :]).astype(out_ref.dtype)
        return carry

    lax.fori_loop(0, tl, row, 0, unroll=min(8, tl))


def _seq_embed_gather_kernel(ids_ref, pos_ref, tok_hbm, out_ref, gather_buf, copy_sem,
                             *, scale, tl, l_pad):
    """HBM-gather fallback (large vocab). One grid step = one (seq tile, batch row).

    tok_hbm    : (V, H) HBM (raw ref; rows gathered by DMA)
    gather_buf : (TL, H) VMEM scratch
    copy_sem   : (1,) DMA semaphore shared by all row copies of this tile
    """
    s = pl.program_id(0)
    b = pl.program_id(1)
    base = b * l_pad + s * tl

    def issue(j, carry):
        tid = ids_ref[base + j]
        pltpu.make_async_copy(
            tok_hbm.at[pl.ds(tid, 1), :],
            gather_buf.at[pl.ds(j, 1), :],
            copy_sem.at[0],
        ).start()
        return carry

    # Partially unrolled issue loop: scalar id load + descriptor push co-issue across slots.
    lax.fori_loop(0, tl, issue, 0, unroll=min(8, tl))

    # Single bulk wait: the DMA semaphore accumulates bytes, and this descriptor's byte count
    # (tl * H * dtype) equals the sum of the tl equal-size row copies issued above.
    pltpu.make_async_copy(
        tok_hbm.at[pl.ds(0, tl), :],
        gather_buf,
        copy_sem.at[0],
    ).wait()

    # Fused sqrt(H) scale + position add; single lane-dense (TL, H) store.
    out_ref[...] = (gather_buf[...] * scale + pos_ref[...]).astype(out_ref.dtype)


def sequence_embedding(ids, tok_table, pos_table, *, token_tile=256, force_hbm_gather=False):
    """token_embedding(ids) * sqrt(H) + position_embedding(arange(L)).  Dropout is a no-op (eval)."""
    B, L = ids.shape
    V, H = tok_table.shape
    max_len = pos_table.shape[0]
    if L > max_len:
        raise ValueError(f"sequence length {L} exceeds max_len {max_len}")

    TL, L_pad = _choose_tiling(L, token_tile)
    num_tiles = L_pad // TL

    # ids -> flattened 1D SMEM scalar-prefetch operand.  Clamp: nn.Embedding would raise on OOB
    # ids; here we clamp so the row gather can never address out of bounds.
    ids_p = jnp.clip(ids.astype(jnp.int32), 0, V - 1)
    ids_p = jnp.pad(ids_p, ((0, 0), (0, L_pad - L))).reshape(-1)

    # Position rows for [0, L_pad); zero-pad past max_len (those rows are sliced away below).
    pos_src = pos_table[: min(L_pad, max_len)].astype(tok_table.dtype)
    if L_pad > max_len:
        pos_src = jnp.pad(pos_src, ((0, L_pad - max_len), (0, 0)))

    scale = float(math.sqrt(H))
    dsize = jnp.dtype(tok_table.dtype).itemsize
    table_bytes = V * H * dsize
    tile_bytes = TL * H * dsize
    # 2x table (Pallas double-buffers inputs) + pos & out tile double buffers + margin.
    resident_need = 2 * table_bytes + 4 * tile_bytes + (2 << 20)
    use_resident = (not force_hbm_gather) and (resident_need <= _RESIDENT_VMEM_BUDGET)

    # Grid (seq_tiles, B) with batch innermost: the pos tile's block index is constant across
    # consecutive steps, so it is fetched once per tile rather than once per (tile, batch row).
    pos_spec = pl.BlockSpec((TL, H), lambda s, b, ids_sm: (s, 0))
    out_spec = pl.BlockSpec((None, TL, H), lambda s, b, ids_sm: (b, s, 0))

    if use_resident:
        kernel = functools.partial(_seq_embed_resident_kernel, scale=scale, tl=TL, l_pad=L_pad)
        tok_spec = pl.BlockSpec((V, H), lambda s, b, ids_sm: (0, 0))   # whole table, VMEM-resident
        scratch = []
        compiler_params = pltpu.CompilerParams(
            dimension_semantics=("parallel", "parallel"),
            vmem_limit_bytes=min(max(32 << 20, resident_need + (4 << 20)), 48 << 20),
        )
    else:
        kernel = functools.partial(_seq_embed_gather_kernel, scale=scale, tl=TL, l_pad=L_pad)
        tok_spec = pl.BlockSpec(memory_space=pl.ANY)                   # table stays in HBM
        scratch = [
            pltpu.VMEM((TL, H), tok_table.dtype),
            pltpu.SemaphoreType.DMA((1,)),
        ]
        compiler_params = pltpu.CompilerParams(
            dimension_semantics=("parallel", "parallel"),
        )

    out = pl.pallas_call(
        kernel,
        out_shape=jax.ShapeDtypeStruct((B, L_pad, H), tok_table.dtype),
        grid_spec=pltpu.PrefetchScalarGridSpec(
            num_scalar_prefetch=1,                       # ids -> SMEM
            grid=(num_tiles, B),
            in_specs=[pos_spec, tok_spec],
            out_specs=out_spec,
            scratch_shapes=scratch,
        ),
        compiler_params=compiler_params,
    )(ids_p, pos_src, tok_table)

    return out[:, :L, :]


def _reference(ids, tok_table, pos_table):
    L = ids.shape[1]
    scale = jnp.sqrt(jnp.float32(tok_table.shape[1]))
    return tok_table[ids] * scale + pos_table[jnp.arange(L)][None, :, :]


if __name__ == "__main__":
    key = jax.random.PRNGKey(0)

    # Config 1: small single-tile demo (resident-table path).
    # Config 2: multi-tile path, minimal-padding tiling TL=152 (resident-table path).
    # Config 3: same shapes, forced HBM DMA-gather fallback (large-vocab code path).
    configs = [
        dict(vocab=64, hidden=128, padding_idx=0, max_len=16, batch=2, seq=8, force_hbm=False),
        dict(vocab=512, hidden=128, padding_idx=0, max_len=320, batch=2, seq=300, force_hbm=False),
        dict(vocab=512, hidden=128, padding_idx=0, max_len=320, batch=2, seq=300, force_hbm=True),
    ]

    for cfg in configs:
        key, k_tok, k_pos, k_ids = jax.random.split(key, 4)

        # nn.Embedding init ~ N(0,1); padding_idx row zeroed (matches nn.Embedding(padding_idx=...)).
        tok_table = jax.random.normal(k_tok, (cfg["vocab"], cfg["hidden"]), dtype=jnp.float32)
        tok_table = tok_table.at[cfg["padding_idx"]].set(0.0)
        pos_table = jax.random.normal(k_pos, (cfg["max_len"], cfg["hidden"]), dtype=jnp.float32)

        ids = jax.random.randint(k_ids, (cfg["batch"], cfg["seq"]), 0, cfg["vocab"], dtype=jnp.int32)
        ids = ids.at[0, -1].set(cfg["padding_idx"])   # exercise the zeroed padding row

        out = sequence_embedding(ids, tok_table, pos_table, force_hbm_gather=cfg["force_hbm"])
        out = jax.block_until_ready(out)

        ref = _reference(ids, tok_table, pos_table)
        assert out.shape == (cfg["batch"], cfg["seq"], cfg["hidden"]), out.shape
        assert jnp.allclose(out, ref, atol=1e-5, rtol=1e-5), float(jnp.max(jnp.abs(out - ref)))

    print("KERNEL_OK")
</pallas_src>

<mosaic_0001>
module attributes {stable_mosaic.version = 11 : i64} {
  func.func @_seq_embed_resident_kernel(%arg0: i32, %arg1: i32, %arg2: memref<16xi32, #tpu.memory_space<smem>>, %arg3: memref<8x128xf32, #tpu.memory_space<vmem>>, %arg4: memref<64x128xf32, #tpu.memory_space<vmem>>, %arg5: memref<1x8x128xf32, #tpu.memory_space<vmem>>) attributes {dimension_semantics = [#tpu.dimension_semantics<parallel>, #tpu.dimension_semantics<parallel>], iteration_bounds = array<i64: 1, 2>, scalar_prefetch = 1 : i64, scratch_operands = 0 : i64, tpu.core_type = #tpu.core_type<tc>, window_params = [{transform_indices = @transform_0, window_bounds = array<i64: 8, 128>}, {pipeline_mode = #tpu.pipeline_mode<synchronous>, transform_indices = @transform_1, window_bounds = array<i64: 64, 128>}, {transform_indices = @transform_2, window_bounds = array<i64: 1, 8, 128>}]} {
    %c8_i32 = arith.constant 8 : i32
    %0 = arith.muli %arg1, %c8_i32 : i32
    %c8_i32_0 = arith.constant 8 : i32
    %1 = arith.muli %arg0, %c8_i32_0 : i32
    %2 = arith.addi %0, %1 : i32
    %c0_i32 = arith.constant 0 : i32
    %3 = arith.addi %2, %c0_i32 : i32
    %4 = arith.index_cast %3 : i32 to index
    %5 = memref.load %arg2[%4] : memref<16xi32, #tpu.memory_space<smem>>
    %6 = arith.index_cast %5 : i32 to index
    %c0 = arith.constant 0 : index
    %7 = vector.load %arg4[%6, %c0] : memref<64x128xf32, #tpu.memory_space<vmem>>, vector<1x128xf32>
    %cst = arith.constant 11.3137083 : f32
    %8 = vector.broadcast %cst : f32 to vector<1x128xf32>
    %9 = arith.mulf %7, %8 : vector<1x128xf32>
    %10 = arith.index_cast %c0_i32 : i32 to index
    %c0_1 = arith.constant 0 : index
    %11 = vector.load %arg3[%10, %c0_1] : memref<8x128xf32, #tpu.memory_space<vmem>>, vector<1x128xf32>
    %12 = arith.addf %9, %11 : vector<1x128xf32>
    %c0_2 = arith.constant 0 : index
    %13 = arith.index_cast %c0_i32 : i32 to index
    %c0_3 = arith.constant 0 : index
    %14 = vector.load %arg5[%c0_2, %13, %c0_3] : memref<1x8x128xf32, #tpu.memory_space<vmem>>, vector<1x1x128xf32>
    %15 = vector.shape_cast %14 : vector<1x1x128xf32> to vector<1x128xf32>
    %16 = vector.shape_cast %12 : vector<1x128xf32> to vector<1x1x128xf32>
    tpu.vector_store %arg5[%c0_2, %13, %c0_3], %16 {strides = array<i32>} : memref<1x8x128xf32, #tpu.memory_space<vmem>>, vector<1x1x128xf32>,
    %c1_i32 = arith.constant 1 : i32
    %17 = arith.addi %2, %c1_i32 : i32
    %18 = arith.index_cast %17 : i32 to index
    %19 = memref.load %arg2[%18] : memref<16xi32, #tpu.memory_space<smem>>
    %20 = arith.index_cast %19 : i32 to index
    %c0_4 = arith.constant 0 : index
    %21 = vector.load %arg4[%20, %c0_4] : memref<64x128xf32, #tpu.memory_space<vmem>>, vector<1x128xf32>
    %cst_5 = arith.constant 11.3137083 : f32
    %22 = vector.broadcast %cst_5 : f32 to vector<1x128xf32>
    %23 = arith.mulf %21, %22 : vector<1x128xf32>
    %24 = arith.index_cast %c1_i32 : i32 to index
    %c0_6 = arith.constant 0 : index
    %25 = vector.load %arg3[%24, %c0_6] : memref<8x128xf32, #tpu.memory_space<vmem>>, vector<1x128xf32>
    %26 = arith.addf %23, %25 : vector<1x128xf32>
    %c0_7 = arith.constant 0 : index
    %27 = arith.index_cast %c1_i32 : i32 to index
    %c0_8 = arith.constant 0 : index
    %28 = vector.load %arg5[%c0_7, %27, %c0_8] : memref<1x8x128xf32, #tpu.memory_space<vmem>>, vector<1x1x128xf32>
    %29 = vector.shape_cast %28 : vector<1x1x128xf32> to vector<1x128xf32>
    %30 = vector.shape_cast %26 : vector<1x128xf32> to vector<1x1x128xf32>
    tpu.vector_store %arg5[%c0_7, %27, %c0_8], %30 {strides = array<i32>} : memref<1x8x128xf32, #tpu.memory_space<vmem>>, vector<1x1x128xf32>,
    %c2_i32 = arith.constant 2 : i32
    %31 = arith.addi %2, %c2_i32 : i32
    %32 = arith.index_cast %31 : i32 to index
    %33 = memref.load %arg2[%32] : memref<16xi32, #tpu.memory_space<smem>>
    %34 = arith.index_cast %33 : i32 to index
    %c0_9 = arith.constant 0 : index
    %35 = vector.load %arg4[%34, %c0_9] : memref<64x128xf32, #tpu.memory_space<vmem>>, vector<1x128xf32>
    %cst_10 = arith.constant 11.3137083 : f32
    %36 = vector.broadcast %cst_10 : f32 to vector<1x128xf32>
    %37 = arith.mulf %35, %36 : vector<1x128xf32>
    %38 = arith.index_cast %c2_i32 : i32 to index
    %c0_11 = arith.constant 0 : index
    %39 = vector.load %arg3[%38, %c0_11] : memref<8x128xf32, #tpu.memory_space<vmem>>, vector<1x128xf32>
    %40 = arith.addf %37, %39 : vector<1x128xf32>
    %c0_12 = arith.constant 0 : index
    %41 = arith.index_cast %c2_i32 : i32 to index
    %c0_13 = arith.constant 0 : index
    %42 = vector.load %arg5[%c0_12, %41, %c0_13] : memref<1x8x128xf32, #tpu.memory_space<vmem>>, vector<1x1x128xf32>
    %43 = vector.shape_cast %42 : vector<1x1x128xf32> to vector<1x128xf32>
    %44 = vector.shape_cast %40 : vector<1x128xf32> to vector<1x1x128xf32>
    tpu.vector_store %arg5[%c0_12, %41, %c0_13], %44 {strides = array<i32>} : memref<1x8x128xf32, #tpu.memory_space<vmem>>, vector<1x1x128xf32>,
    %c3_i32 = arith.constant 3 : i32
    %45 = arith.addi %2, %c3_i32 : i32
    %46 = arith.index_cast %45 : i32 to index
    %47 = memref.load %arg2[%46] : memref<16xi32, #tpu.memory_space<smem>>
    %48 = arith.index_cast %47 : i32 to index
    %c0_14 = arith.constant 0 : index
    %49 = vector.load %arg4[%48, %c0_14] : memref<64x128xf32, #tpu.memory_space<vmem>>, vector<1x128xf32>
    %cst_15 = arith.constant 11.3137083 : f32
    %50 = vector.broadcast %cst_15 : f32 to vector<1x128xf32>
    %51 = arith.mulf %49, %50 : vector<1x128xf32>
    %52 = arith.index_cast %c3_i32 : i32 to index
    %c0_16 = arith.constant 0 : index
    %53 = vector.load %arg3[%52, %c0_16] : memref<8x128xf32, #tpu.memory_space<vmem>>, vector<1x128xf32>
    %54 = arith.addf %51, %53 : vector<1x128xf32>
    %c0_17 = arith.constant 0 : index
    %55 = arith.index_cast %c3_i32 : i32 to index
    %c0_18 = arith.constant 0 : index
    %56 = vector.load %arg5[%c0_17, %55, %c0_18] : memref<1x8x128xf32, #tpu.memory_space<vmem>>, vector<1x1x128xf32>
    %57 = vector.shape_cast %56 : vector<1x1x128xf32> to vector<1x128xf32>
    %58 = vector.shape_cast %54 : vector<1x128xf32> to vector<1x1x128xf32>
    tpu.vector_store %arg5[%c0_17, %55, %c0_18], %58 {strides = array<i32>} : memref<1x8x128xf32, #tpu.memory_space<vmem>>, vector<1x1x128xf32>,
    %c4_i32 = arith.constant 4 : i32
    %59 = arith.addi %2, %c4_i32 : i32
    %60 = arith.index_cast %59 : i32 to index
    %61 = memref.load %arg2[%60] : memref<16xi32, #tpu.memory_space<smem>>
    %62 = arith.index_cast %61 : i32 to index
    %c0_19 = arith.constant 0 : index
    %63 = vector.load %arg4[%62, %c0_19] : memref<64x128xf32, #tpu.memory_space<vmem>>, vector<1x128xf32>
    %cst_20 = arith.constant 11.3137083 : f32
    %64 = vector.broadcast %cst_20 : f32 to vector<1x128xf32>
    %65 = arith.mulf %63, %64 : vector<1x128xf32>
    %66 = arith.index_cast %c4_i32 : i32 to index
    %c0_21 = arith.constant 0 : index
    %67 = vector.load %arg3[%66, %c0_21] : memref<8x128xf32, #tpu.memory_space<vmem>>, vector<1x128xf32>
    %68 = arith.addf %65, %67 : vector<1x128xf32>
    %c0_22 = arith.constant 0 : index
    %69 = arith.index_cast %c4_i32 : i32 to index
    %c0_23 = arith.constant 0 : index
    %70 = vector.load %arg5[%c0_22, %69, %c0_23] : memref<1x8x128xf32, #tpu.memory_space<vmem>>, vector<1x1x128xf32>
    %71 = vector.shape_cast %70 : vector<1x1x128xf32> to vector<1x128xf32>
    %72 = vector.shape_cast %68 : vector<1x128xf32> to vector<1x1x128xf32>
    tpu.vector_store %arg5[%c0_22, %69, %c0_23], %72 {strides = array<i32>} : memref<1x8x128xf32, #tpu.memory_space<vmem>>, vector<1x1x128xf32>,
    %c5_i32 = arith.constant 5 : i32
    %73 = arith.addi %2, %c5_i32 : i32
    %74 = arith.index_cast %73 : i32 to index
    %75 = memref.load %arg2[%74] : memref<16xi32, #tpu.memory_space<smem>>
    %76 = arith.index_cast %75 : i32 to index
    %c0_24 = arith.constant 0 : index
    %77 = vector.load %arg4[%76, %c0_24] : memref<64x128xf32, #tpu.memory_space<vmem>>, vector<1x128xf32>
    %cst_25 = arith.constant 11.3137083 : f32
    %78 = vector.broadcast %cst_25 : f32 to vector<1x128xf32>
    %79 = arith.mulf %77, %78 : vector<1x128xf32>
    %80 = arith.index_cast %c5_i32 : i32 to index
    %c0_26 = arith.constant 0 : index
    %81 = vector.load %arg3[%80, %c0_26] : memref<8x128xf32, #tpu.memory_space<vmem>>, vector<1x128xf32>
    %82 = arith.addf %79, %81 : vector<1x128xf32>
    %c0_27 = arith.constant 0 : index
    %83 = arith.index_cast %c5_i32 : i32 to index
    %c0_28 = arith.constant 0 : index
    %84 = vector.load %arg5[%c0_27, %83, %c0_28] : memref<1x8x128xf32, #tpu.memory_space<vmem>>, vector<1x1x128xf32>
    %85 = vector.shape_cast %84 : vector<1x1x128xf32> to vector<1x128xf32>
    %86 = vector.shape_cast %82 : vector<1x128xf32> to vector<1x1x128xf32>
    tpu.vector_store %arg5[%c0_27, %83, %c0_28], %86 {strides = array<i32>} : memref<1x8x128xf32, #tpu.memory_space<vmem>>, vector<1x1x128xf32>,
    %c6_i32 = arith.constant 6 : i32
    %87 = arith.addi %2, %c6_i32 : i32
    %88 = arith.index_cast %87 : i32 to index
    %89 = memref.load %arg2[%88] : memref<16xi32, #tpu.memory_space<smem>>
    %90 = arith.index_cast %89 : i32 to index
    %c0_29 = arith.constant 0 : index
    %91 = vector.load %arg4[%90, %c0_29] : memref<64x128xf32, #tpu.memory_space<vmem>>, vector<1x128xf32>
    %cst_30 = arith.constant 11.3137083 : f32
    %92 = vector.broadcast %cst_30 : f32 to vector<1x128xf32>
    %93 = arith.mulf %91, %92 : vector<1x128xf32>
    %94 = arith.index_cast %c6_i32 : i32 to index
    %c0_31 = arith.constant 0 : index
    %95 = vector.load %arg3[%94, %c0_31] : memref<8x128xf32, #tpu.memory_space<vmem>>, vector<1x128xf32>
    %96 = arith.addf %93, %95 : vector<1x128xf32>
    %c0_32 = arith.constant 0 : index
    %97 = arith.index_cast %c6_i32 : i32 to index
    %c0_33 = arith.constant 0 : index
    %98 = vector.load %arg5[%c0_32, %97, %c0_33] : memref<1x8x128xf32, #tpu.memory_space<vmem>>, vector<1x1x128xf32>
    %99 = vector.shape_cast %98 : vector<1x1x128xf32> to vector<1x128xf32>
    %100 = vector.shape_cast %96 : vector<1x128xf32> to vector<1x1x128xf32>
    tpu.vector_store %arg5[%c0_32, %97, %c0_33], %100 {strides = array<i32>} : memref<1x8x128xf32, #tpu.memory_space<vmem>>, vector<1x1x128xf32>,
    %c7_i32 = arith.constant 7 : i32
    %101 = arith.addi %2, %c7_i32 : i32
    %102 = arith.index_cast %101 : i32 to index
    %103 = memref.load %arg2[%102] : memref<16xi32, #tpu.memory_space<smem>>
    %104 = arith.index_cast %103 : i32 to index
    %c0_34 = arith.constant 0 : index
    %105 = vector.load %arg4[%104, %c0_34] : memref<64x128xf32, #tpu.memory_space<vmem>>, vector<1x128xf32>
    %cst_35 = arith.constant 11.3137083 : f32
    %106 = vector.broadcast %cst_35 : f32 to vector<1x128xf32>
    %107 = arith.mulf %105, %106 : vector<1x128xf32>
    %108 = arith.index_cast %c7_i32 : i32 to index
    %c0_36 = arith.constant 0 : index
    %109 = vector.load %arg3[%108, %c0_36] : memref<8x128xf32, #tpu.memory_space<vmem>>, vector<1x128xf32>
    %110 = arith.addf %107, %109 : vector<1x128xf32>
    %c0_37 = arith.constant 0 : index
    %111 = arith.index_cast %c7_i32 : i32 to index
    %c0_38 = arith.constant 0 : index
    %112 = vector.load %arg5[%c0_37, %111, %c0_38] : memref<1x8x128xf32, #tpu.memory_space<vmem>>, vector<1x1x128xf32>
    %113 = vector.shape_cast %112 : vector<1x1x128xf32> to vector<1x128xf32>
    %114 = vector.shape_cast %110 : vector<1x128xf32> to vector<1x1x128xf32>
    tpu.vector_store %arg5[%c0_37, %111, %c0_38], %114 {strides = array<i32>} : memref<1x8x128xf32, #tpu.memory_space<vmem>>, vector<1x1x128xf32>,
    %c8_i32_39 = arith.constant 8 : i32
    return
  }
  func.func @transform_0(%arg0: i32, %arg1: i32, %arg2: memref<16xi32, #tpu.memory_space<smem>>) -> (i32, i32) {
    %c0_i32 = arith.constant 0 : i32
    %c0_i32_0 = arith.constant 0 : i32
    return %arg0, %c0_i32 : i32, i32
  }
  func.func @transform_1(%arg0: i32, %arg1: i32, %arg2: memref<16xi32, #tpu.memory_space<smem>>) -> (i32, i32) {
    %c0_i32 = arith.constant 0 : i32
    %c0_i32_0 = arith.constant 0 : i32
    %c0_i32_1 = arith.constant 0 : i32
    return %c0_i32, %c0_i32_0 : i32, i32
  }
  func.func @transform_2(%arg0: i32, %arg1: i32, %arg2: memref<16xi32, #tpu.memory_space<smem>>) -> (i32, i32, i32) {
    %c0_i32 = arith.constant 0 : i32
    %c0_i32_0 = arith.constant 0 : i32
    return %arg1, %arg0, %c0_i32 : i32, i32, i32
  }
}

</mosaic_0001>

<bundles_post_ra>
// kernel: tpu_custom_call.1
= control target key start
LH: loop header
LB: loop body
LE: loop exit
PB: predicated region body
PF: predicated region fallthrough
CT: control target
= control target key end

     0   :  { %s843_s0 = inlined_call_operand.hbm [shape: s32[16], index: 0, kind: input, shape index: {}]   ;;  %s844_s1 = inlined_call_operand.hbm [shape: f32[8,128], index: 1, kind: input, shape index: {}]   ;;  %s845_s2 = inlined_call_operand.hbm [shape: f32[64,128], index: 2, kind: input, shape index: {}]   ;;  %s846_s3 = inlined_call_operand.hbm [shape: f32[2,8,128], index: 3, kind: output, shape index: {}]  }
   0x1   :  { %s438_s14 = scalar_lea.hbm %s843_s0, 16 }
   0x2   :  { %p439_p0 = scmp.ne.s32.totalorder %s843_s0, %s438_s14  ;;  %p442_p1 = scmp.lt.u32.totalorder %s438_s14, %s843_s0 }
   0x4   :  { %p444_p2 = pnand %p442_p1, %p439_p0 }
   0x6   :  { %447 = shalt.err (!%p444_p2)  }
   0x7   :  { %s594_s19 = smov [#allocation3]  }
   0x8   :  { %9 = dma.hbm_to_smem %s843_s0, 16, %s594_s19, [#allocation2] }
   0x9   :  { %556 = dma.done.wait [#allocation2], 16 }
   0xa   :  { %557 = vsyncadd [#allocation2], 4294967280 }
   0xb   :  { %11 = sfence }
   0xc   :  { %12 = vsyncpa [#allocation5], 0 }
   0xd   :  { %13 = vsyncpa [#allocation8], 0 }
   0xe   :  { %14 = vsyncpa [#allocation6], 0 }
   0xf   :  { %16 = vsyncpa [#allocation6 + $0x1], 0  ;;  %s632_s22 = smov 0   ;;  %s634_s23 = smov 0  }
  0x10   :  { %s636_s24 = smov 0   ;;  %s638_s25 = smov 0  }
  0x11   :  { %s640_s26 = smov 0   ;;  %s642_s27 = smov 0  }
  0x12 LB: > { %s345_s0 = sadd.s32 4294967295, %s592_s27   ;;  %s346_s28 = sadd.s32 4294967294, %s592_s27   ;;  %s592_s27 = sphi %s642_s27, %s22_s27   ;;  %s588_s26 = sphi %s640_s26, %s864_s26   ;;  %s584_s25 = sphi %s638_s25, %s863_s25   ;;  %s580_s24 = sphi %s636_s24, %s862_s24   ;;  %s576_s23 = sphi %s634_s23, %s861_s23   ;;  %s572_s22 = sphi %s632_s22, %s860_s22  }
  0x13   : > { %s31_s29 = sadd.s32 1, %s588_s26  ;;  %s90_s30 = sadd.s32 1, %s580_s24 }
  0x14   : > { %p32_p3 = scmp.ge.s32.totalorder %s31_s29, 2  ;;  %p100_p4 = scmp.ne.s32.totalorder %s580_s24, %s576_s23 }
  0x15   : > { %p101_p5 = scmp.eq.s32.totalorder %s345_s0, 1  ;;  %p106_p6 = scmp.ne.s32.totalorder %s576_s23, %s572_s22 }
  0x16   : > { %s866_s29 = smov (%p32_p3, %s31_s29), 0  ;;  %p107_p8 = scmp.eq.s32.totalorder %s346_s28, 1 }
  0x17   : > { %p672_p7 = por %p101_p5, %p100_p4  ;;  %s85_s5 = ssub.s32 %s588_s26, %s866_s29 }
  0x18   : > { %p347_p9 = scmp.ge.s32.totalorder %s592_s27, 1  ;;  %p88_p10 = scmp.eq.s32.totalorder %s85_s5, 0 }
  0x19   : > { %s851_s4 = scalar_select %p672_p7, 1, 0 }
  0x1a   : > { %p679_p11 = por %p107_p8, %p106_p6  ;;  %p114_p12 = scmp.lt.s32.totalorder %s592_s27, 3 }
  0x1b   : > { %s685_s7 = scalar_select %p88_p10, %s580_s24, %s90_s30  }
  0x1c   : > { %s852_s6 = scalar_select %p679_p11, 1, 0 }
  0x1d   : > { %p687_p13 = pnand %p347_p9, %p114_p12  ;;  %p691_p0 = scmp.eq.s32.totalorder %s345_s0, 0 }
  0x1e   : > { %s595_s10 = smov [#allocation4]   ;;  %s596_s12 = smov [#allocation7]  }
  0x1f   : > { %s853_s8 = scalar_select %p687_p13, 1, 0 }
  0x20   : > { %s854_s9 = scalar_select %p691_p0, 1, 0 }
  0x21   : > { %p369_p1 = pneg %p687_p13  ;;  %s129_s11 = sshll.u32 %s595_s10, 4  ;;  %s130_s11 = int_to_ptr.vmem [resolvable:$true] %s129_s11 }
  0x22   : > { %s139_s13 = sshll.u32 %s596_s12, 4  ;;  %s448_s17 = scalar_lea.hbm %s844_s1, 128  ;;  %s703_s13 = int_to_ptr.vmem [resolvable:$true] %s139_s13 }
  0x23   : > { %p699_p2 = pnand %p691_p0, %p369_p1  ;;  %p449_p3 = scmp.ne.s32.totalorder %s844_s1, %s448_s17 }
  0x24   : > { %p455_p8 = scmp.lt.u32.totalorder %s448_s17, %s844_s1 }
  0x25   : > { %p450_p4 = pneg %p699_p2 }
  0x27   : > { %p451_p5 = pnand %p450_p4, %p449_p3 }
  0x29   : > { %p452_p6 = pneg %p451_p5 }
  0x2b   : > { %p457_p9 = pnand %p455_p8, %p452_p6 }
  0x2d   : > { %460 = shalt.err (!%p457_p9)
}
  0x2e   : > { %s461_s0 = scalar_lea.vmem %s130_s11, 128  ;;  %p469_p11 = scmp.lt.s32.totalorder %s130_s11, %s130_s11 }
  0x2f   : > { %p462_p10 = scmp.ne.s32.totalorder %s130_s11, %s461_s0  ;;  %p470_p7 = scmp.lt.s32.totalorder %s461_s0, %s461_s0 }
  0x31   : > { %p464_p12 = pnand %p462_p10, %p450_p4  ;;  %p471_p0 = por %p470_p7, %p469_p11 }
  0x33   : > { %p465_p1 = pneg %p464_p12 }
  0x35   : > { %p472_p13 = pnand %p471_p0, %p465_p1 }
  0x37   : > { %475 = shalt.err (!%p472_p13)
}
  0x38   : > { %372 = dma.hbm_to_vmem [thread:$0]  (!%p699_p2), %s844_s1, 128, %s130_s11, [#allocation5]  }
  0x39   : > { %s476_s12 = scalar_lea.hbm %s845_s2, 1024 }
  0x3a   : > { %p477_p3 = scmp.ne.s32.totalorder %s845_s2, %s476_s12  ;;  %p483_p13 = scmp.lt.u32.totalorder %s476_s12, %s845_s2 }
  0x3c   : > { %p479_p7 = pnand %p477_p3, %p450_p4 }
  0x3e   : > { %p480_p11 = pneg %p479_p7 }
  0x40   : > { %p485_p0 = pnand %p483_p13, %p480_p11 }
  0x42   : > { %488 = shalt.err (!%p485_p0)
}
  0x43   : > { %s489_s11 = scalar_lea.vmem %s703_s13, 1024  ;;  %p497_p9 = scmp.lt.s32.totalorder %s703_s13, %s703_s13 }
  0x44   : > { %p490_p5 = scmp.ne.s32.totalorder %s703_s13, %s489_s11  ;;  %p498_p10 = scmp.lt.s32.totalorder %s489_s11, %s489_s11 }
  0x46   : > { %p492_p6 = pnand %p490_p5, %p450_p4  ;;  %p499_p12 = por %p498_p10, %p497_p9 }
  0x48   : > { %p493_p8 = pneg %p492_p6 }
  0x4a   : > { %p500_p1 = pnand %p499_p12, %p493_p8 }
  0x4c   : > { %503 = shalt.err (!%p500_p1)
}
  0x4d   : > { %s597_s19 = smov 128   ;;  %s598_s20 = smov 8  }
  0x4e   : > { %375 = dma.hbm_to_vmem [thread:$0]  (!%p699_p2), %s845_s2, 1024, %s703_s13, [#allocation8], %s597_s19, %s597_s19, %s598_s20  }
  0x4f   : > { %p856_p3 = scmp.ne.s32.totalorder %s853_s8, 0 }
  0x50   : > { %p857_p4 = scmp.ne.s32.totalorder (!%p856_p3), %s854_s9, 0 }
  0x51   : > { %155 = sbr.rel (%p856_p3) target bundleno = 131 (0x83), region = 28 }
  0x58   : > { %559 = dma.done.wait (%p857_p4), [#allocation5], 128  }
  0x59   : > { %561 = vsyncadd (%p857_p4), [#allocation5], 4294967168 }
  0x5a   : > { %563 = dma.done.wait (%p857_p4), [#allocation8], 1024  }
  0x5b   : > { %565 = vsyncadd (%p857_p4), [#allocation8], 4294966272  ;;  %s173_s14 = sand.u32 1, %s576_s23   ;;  %s764_s13 = sshll.u32 %s584_s25, 3  ;;  %v183_v1 = vld [vmem:[#allocation4] sm:$0x1] }
  0x5c   : > { %s179_s8 = sld [smem:[#allocation3 + %s764_s13]]  ;;  %s353_s28 = sshll.u32 %s173_s14, 3  ;;  %v191_v3 = vld [vmem:[#allocation4 + $0x1] sm:$0x1]  ;;  %v199_v4 = vld [vmem:[#allocation4 + $0x2] sm:$0x1] }
  0x5d   : > { %s186_s30 = sadd.s32 1, %s764_s13  ;;  %s194_s5 = sadd.s32 2, %s764_s13  ;;  %v207_v8 = vld [vmem:[#allocation4 + $0x3] sm:$0x1]  ;;  %v215_v9 = vld [vmem:[#allocation4 + $0x4] sm:$0x1] }
  0x5e   : > { %s187_s9 = sld [smem:[#allocation3 + %s186_s30]]  ;;  %s202_s12 = sadd.s32 3, %s764_s13  ;;  %v223_v21 = vld [vmem:[#allocation4 + $0x5] sm:$0x1]  ;;  %v231_v24 = vld [vmem:[#allocation4 + $0x6] sm:$0x1] }
  0x5f   : > { %s195_s10 = sld [smem:[#allocation3 + %s194_s5]]  ;;  %s210_s15 = sadd.s32 4, %s764_s13  ;;  %v239_v28 = vld [vmem:[#allocation4 + $0x7] sm:$0x1] }
  0x60   : > { %s203_s16 = sld [smem:[#allocation3 + %s202_s12]]  ;;  %s218_s18 = sadd.s32 5, %s764_s13 }
  0x61   : > { %s211_s17 = sld [smem:[#allocation3 + %s210_s15]]  ;;  %s226_s20 = sadd.s32 6, %s764_s13 }
  0x62   : > { %s180_s11 = scalar_lea.vmem [#allocation7], %s179_s8  ;;  %s774_s19 = sld [smem:[#allocation3 + %s218_s18]] }
  0x63   : > { %v181_v0 = vld [vmem:[%s180_s11] sm:$0x1]  ;;  %s227_s30 = sld [smem:[#allocation3 + %s226_s20]]  ;;  %s234_s5 = sadd.s32 7, %s764_s13 }
  0x64   : > { %v182_v2 = vmul.f32 11.313708, %v181_v0  ;;  %s188_s21 = scalar_lea.vmem [#allocation7], %s187_s9  ;;  %s778_s8 = scalar_lea.vmem [#allocation9], %s353_s28 }
  0x65   : > { %v189_v6 = vld [vmem:[%s188_s21] sm:$0x1]  ;;  %s196_s0 = scalar_lea.vmem [#allocation7], %s195_s10  ;;  %s235_s10 = sld [smem:[#allocation3 + %s234_s5]] }
  0x66   : > { %v184_v5 = vadd.f32 %v183_v1, %v182_v2  ;;  %v197_v7 = vld [vmem:[%s196_s0] sm:$0x1]  ;;  %v190_v10 = vmul.f32 11.313708, %v189_v6  ;;  %s204_s12 = scalar_lea.vmem [#allocation7], %s203_s16  ;;  %s356_s16 = sshll.u32 %s584_s25, 7 }
  0x67   : > { %v198_v11 = vmul.f32 11.313708, %v197_v7  ;;  %v205_v12 = vld [vmem:[%s204_s12] sm:$0x1]  ;;  %s212_s9 = scalar_lea.vmem [#allocation7], %s211_s17  ;;  %s257_s17 = sshll.u32 %s778_s8, 4  ;;  %s795_s17 = int_to_ptr.vmem [resolvable:$true] %s257_s17 }
  0x68   : > { %185 = vst [vmem:[%s778_s8] sm:$0x1] %v184_v5  ;;  %v213_v13 = vld [vmem:[%s212_s9] sm:$0x1]  ;;  %v192_v14 = vadd.f32 %v191_v3, %v190_v10  ;;  %v206_v16 = vmul.f32 11.313708, %v205_v12  ;;  %s220_s13 = scalar_lea.vmem [#allocation7], %s774_s19  ;;  %s793_s19 = scalar_lea.hbm %s846_s3, %s356_s16 }
  0x69   : > { %v200_v15 = vadd.f32 %v199_v4, %v198_v11  ;;  %v214_v17 = vmul.f32 11.313708, %v213_v13  ;;  %v221_v20 = vld [vmem:[%s220_s13] sm:$0x1]  ;;  %s228_s28 = scalar_lea.vmem [#allocation7], %s227_s30  ;;  %s243_s20 = scalar_lea.sflag [#allocation6], %s173_s14 }
  0x6a   : > { %193 = vst [vmem:[%s778_s8 + $0x1] sm:$0x1] %v192_v14  ;;  %v208_v18 = vadd.f32 %v207_v8, %v206_v16  ;;  %v222_v22 = vmul.f32 11.313708, %v221_v20  ;;  %v229_v23 = vld [vmem:[%s228_s28] sm:$0x1] }
  0x6b   : > { %201 = vst [vmem:[%s778_s8 + $0x2] sm:$0x1] %v200_v15  ;;  %v216_v19 = vadd.f32 %v215_v9, %v214_v17  ;;  %v230_v26 = vmul.f32 11.313708, %v229_v23  ;;  %s236_s15 = scalar_lea.vmem [#allocation7], %s235_s10  ;;  %s504_s25 = scalar_lea.vmem %s795_s17, 128 }
  0x6c   : > { %209 = vst [vmem:[%s778_s8 + $0x3] sm:$0x1] %v208_v18  ;;  %v224_v25 = vadd.f32 %v223_v21, %v222_v22  ;;  %v237_v27 = vld [vmem:[%s236_s15] sm:$0x1]  ;;  %p505_p2 = scmp.ne.s32.totalorder %s795_s17, %s504_s25  ;;  %p858_p7 = scmp.ne.s32.totalorder %s851_s4, 0 }
  0x6d   : > { %217 = vst [vmem:[%s778_s8 + $0x4] sm:$0x1] %v216_v19  ;;  %v232_v29 = vadd.f32 %v231_v24, %v230_v26  ;;  %v238_v30 = vmul.f32 11.313708, %v237_v27  ;;  %s599_s21 = smov [#allocation9]  }
  0x6e   : > { %225 = vst [vmem:[%s778_s8 + $0x5] sm:$0x1] %v224_v25  ;;  %p506_p11 = pnand %p505_p2, %p858_p7  ;;  %s508_s0 = sshll.u32 %s599_s21, 4  ;;  %s509_s0 = int_to_ptr.vmem [resolvable:$false] %s508_s0 }
  0x6f   : > { %233 = vst [vmem:[%s778_s8 + $0x6] sm:$0x1] %v232_v29  ;;  %v240_v31 = vadd.f32 %v239_v28, %v238_v30  ;;  %s510_s30 = scalar_lea.vmem %s509_s0, 256  ;;  %p511_p0 = scmp.lt.s32.totalorder %s795_s17, %s509_s0 }
  0x70   : > { %p507_p13 = pneg %p506_p11  ;;  %p512_p5 = scmp.lt.s32.totalorder %s510_s30, %s504_s25 }
  0x71   : > { %241 = vst [vmem:[%s778_s8 + $0x7] sm:$0x1] %v240_v31 }
  0x72   : > { %p513_p6 = por %p512_p5, %p511_p0 }
  0x74   : > { %p514_p8 = pnand %p513_p6, %p507_p13 }
  0x76   : > { %517 = shalt.err (!%p514_p8)
}
  0x77   : > { %s518_s14 = scalar_lea.hbm %s793_s19, 128  ;;  %s522_s12 = scalar_lea.hbm %s846_s3, 256 }
  0x78   : > { %p519_p9 = scmp.ne.s32.totalorder %s793_s19, %s518_s14  ;;  %p523_p1 = scmp.lt.u32.totalorder %s793_s19, %s846_s3 }
  0x79   : > { %p524_p3 = scmp.lt.u32.totalorder %s522_s12, %s518_s14  ;;  %p526_p2 = scmp.lt.u32.totalorder %s518_s14, %s793_s19 }
  0x7a   : > { %p520_p10 = pnand %p519_p9, %p858_p7 }
  0x7b   : > { %p525_p4 = por %p524_p3, %p523_p1 }
  0x7c   : > { %p521_p12 = pneg %p520_p10 }
  0x7d   : > { %p527_p11 = por %p526_p2, %p525_p4 }
  0x7f   : > { %p528_p13 = pnand %p527_p11, %p521_p12 }
  0x81   : > { %531 = shalt.err (!%p528_p13)
}
  0x82   : > { %367 = dma.vmem_to_hbm [thread:$0]  (%p858_p7), %s795_s17, 128, %s793_s19, %s243_s20  }
  0x83 PF: > { %p384_p0 = scmp.ge.s32.totalorder %s592_s27, 2  ;;  %s269_s13 = sand.u32 1, %s572_s22  }
  0x84   : > { %p859_p5 = scmp.ne.s32.totalorder %s852_s6, 0  ;;  %s270_s28 = scalar_lea.sflag [#allocation6], %s269_s13 }
  0x86   : > { %p377_p6 = pnand %p384_p0, %p859_p5 }
  0x88   : > { %567 = dma.done.wait (!%p377_p6), %s270_s28, 128  }
  0x89   : > { %569 = vsyncadd (!%p377_p6), %s270_s28, 4294967168  ;;  %s22_s27 = sadd.s32 1, %s592_s27   ;;  %s860_s22 = smov %s576_s23 }
  0x8a   : > { %p19_p8 = scmp.ge.s32.totalorder %s22_s27, 4   ;;  %s861_s23 = smov %s580_s24 }
  0x8b   : > { %s862_s24 = smov %s685_s7  ;;  %s863_s25 = smov %s588_s26 }
  0x8c   : > { %s864_s26 = smov %s866_s29  ;;  %21 = sbr.rel (!%p19_p8) target bundleno = 18 (0x12), region = 78 }
  0x93   :  { %275 = vsyncpa [#allocation5], 1 }
  0x94   :  { %277 = vsyncpa [#allocation5 + $0x1], 1 }
  0x95   :  { %278 = vsyncpa [#allocation8], 1 }
  0x96   :  { %279 = vsyncpa [#allocation6], 1 }
  0x97   :  { %281 = vsyncpa [#allocation6 + $0x1], 1 }

</bundles_post_ra>
